<compile_context>
chip_gen: v6e
topology: v6e:2x2x1
jax: 0.10.0
libtpu: 0.0.40
codegen_flags: <defaults>
</compile_context>

<pallas_src>
import math

import jax
import jax.numpy as jnp
from jax import lax
from jax.experimental import pallas as pl
from jax.experimental.pallas import tpu as pltpu

SCALE = math.sqrt(0.5)  # torch.sqrt(torch.FloatTensor([0.5]))


def attention_kernel(emb_ref, conv_ref, enc_conv_ref, enc_comb_ref,
                     w_h2e_ref, b_h2e_ref, w_e2h_ref, b_e2h_ref,
                     attn_ref, out_ref):
    emb = emb_ref[0]            # (T, E)
    conv = conv_ref[0]          # (H, T)   native NCL layout, no transpose
    enc_conv = enc_conv_ref[0]  # (S, E)
    enc_comb = enc_comb_ref[0]  # (S, E)
    w_h2e = w_h2e_ref[...]      # (H, E)   = SCALE * hidden2embed.weight.T
    b_h2e = b_h2e_ref[...]      # (1, E)   = SCALE * hidden2embed.bias
    w_e2h = w_e2h_ref[...]      # (E, H)   = SCALE * embed2hidden.weight.T
    b_e2h = b_e2h_ref[...]      # (H, 1)   = SCALE * embed2hidden.bias (column)

    # SCALE * conved_emb = conv^T @ (SCALE*W_h2e) + SCALE*b_h2e   -> (T, E)
    conved_emb_s = lax.dot_general(
        conv, w_h2e, (((0,), (0,)), ((), ())),
        preferred_element_type=jnp.float32) + b_h2e
    # combined = (conved_emb + embedded) * SCALE                  -> (T, E)
    combined = conved_emb_s + emb * SCALE

    # energy = combined @ encoder_conved^T  (contract E on both)  -> (T, S)
    energy = lax.dot_general(
        combined, enc_conv, (((1,), (1,)), ((), ())),
        preferred_element_type=jnp.float32)

    # softmax over S (max-subtracted, reciprocal on the EUP)
    m = jnp.max(energy, axis=-1, keepdims=True)
    p = jnp.exp(energy - m)
    inv = pl.reciprocal(jnp.sum(p, axis=-1, keepdims=True), approx=False)
    attn = p * inv
    attn_ref[0] = attn

    # (attn @ encoder_combined)^T = enc_comb^T @ attn^T           -> (E, T)
    att_enc_t = lax.dot_general(
        enc_comb, attn, (((0,), (1,)), ((), ())),
        preferred_element_type=jnp.float32)
    # SCALE * embed2hidden(...)^T = (SCALE*W_e2h)^T @ (E,T) + SCALE*b_e2h -> (H, T)
    att_enc_t = lax.dot_general(
        w_e2h, att_enc_t, (((0,), (0,)), ((), ())),
        preferred_element_type=jnp.float32) + b_e2h

    # attended_combined = (conved + attended_encoding^T) * SCALE  -> (H, T)
    out_ref[0] = conv * SCALE + att_enc_t


def conv_seq2seq_attention(embedded, conved, encoder_conved, encoder_combined,
                           w_h2e, b_h2e, w_e2h, b_e2h):
    """embedded (B,T,E), conved (B,H,T), encoder_* (B,S,E), w_h2e (H,E),
    b_h2e (1,E), w_e2h (E,H), b_e2h (1,H)
    -> (attn (B,T,S), attended_combined (B,H,T))."""
    B, T, E = embedded.shape
    H = conved.shape[1]
    S = encoder_conved.shape[1]

    # Fold the sqrt(0.5) scales into the (tiny) weights/biases once.
    w_h2e_s = w_h2e * SCALE                      # (H, E)
    b_h2e_s = b_h2e * SCALE                      # (1, E)
    w_e2h_s = w_e2h * SCALE                      # (E, H)
    b_e2h_s = (b_e2h * SCALE).reshape(H, 1)      # (H, 1) column for (H,T) add

    attn, attended_combined = pl.pallas_call(
        attention_kernel,
        out_shape=(jax.ShapeDtypeStruct((B, T, S), jnp.float32),
                   jax.ShapeDtypeStruct((B, H, T), jnp.float32)),
        grid_spec=pl.GridSpec(
            grid=(B,),
            in_specs=[
                pl.BlockSpec((1, T, E), lambda b: (b, 0, 0)),   # embedded
                pl.BlockSpec((1, H, T), lambda b: (b, 0, 0)),   # conved (native NCL)
                pl.BlockSpec((1, S, E), lambda b: (b, 0, 0)),   # encoder_conved
                pl.BlockSpec((1, S, E), lambda b: (b, 0, 0)),   # encoder_combined
                pl.BlockSpec((H, E), lambda b: (0, 0)),         # scaled W hidden2embed^T
                pl.BlockSpec((1, E), lambda b: (0, 0)),         # scaled b hidden2embed
                pl.BlockSpec((E, H), lambda b: (0, 0)),         # scaled W embed2hidden^T
                pl.BlockSpec((H, 1), lambda b: (0, 0)),         # scaled b embed2hidden
            ],
            out_specs=[
                pl.BlockSpec((1, T, S), lambda b: (b, 0, 0)),   # attention
                pl.BlockSpec((1, H, T), lambda b: (b, 0, 0)),   # attended_combined
            ],
        ),
        compiler_params=pltpu.CompilerParams(dimension_semantics=("parallel",)),
    )(embedded, conved, encoder_conved, encoder_combined,
      w_h2e_s, b_h2e_s, w_e2h_s, b_e2h_s)

    return attn, attended_combined


def reference(embedded, conved, encoder_conved, encoder_combined,
              w_h2e, b_h2e, w_e2h, b_e2h):
    """Pure-JAX mirror of the PyTorch forward, for correctness checking."""
    conved_emb = jnp.einsum('bht,he->bte', conved, w_h2e) + b_h2e[0]
    combined = (conved_emb + embedded) * SCALE
    energy = jnp.einsum('bte,bse->bts', combined, encoder_conved)
    attention = jax.nn.softmax(energy, axis=-1)
    att_enc = jnp.einsum('bts,bse->bte', attention, encoder_combined)
    att_enc = jnp.einsum('bte,eh->bth', att_enc, w_e2h) + b_e2h[0]
    attended_combined = (conved + jnp.transpose(att_enc, (0, 2, 1))) * SCALE
    return attention, attended_combined


if __name__ == "__main__":
    B, T, S = 2, 8, 16          # batch, target len, source len
    E, H = 32, 64               # embedding_dim, hidden_size

    key = jax.random.PRNGKey(0)
    ks = jax.random.split(key, 8)

    embedded = jax.random.normal(ks[0], (B, T, E), jnp.float32)
    conved = jax.random.normal(ks[1], (B, H, T), jnp.float32)
    encoder_conved = jax.random.normal(ks[2], (B, S, E), jnp.float32)
    encoder_combined = jax.random.normal(ks[3], (B, S, E), jnp.float32)

    # Deterministic parameter init (Linear(H,E) and Linear(E,H)), stored
    # pre-transposed so the kernel can do x @ W directly.
    w_h2e = jax.random.normal(ks[4], (H, E), jnp.float32) * (1.0 / math.sqrt(H))
    b_h2e = jax.random.normal(ks[5], (1, E), jnp.float32) * 0.1
    w_e2h = jax.random.normal(ks[6], (E, H), jnp.float32) * (1.0 / math.sqrt(E))
    b_e2h = jax.random.normal(ks[7], (1, H), jnp.float32) * 0.1

    attn, attended = jax.block_until_ready(
        conv_seq2seq_attention(embedded, conved, encoder_conved,
                               encoder_combined, w_h2e, b_h2e, w_e2h, b_e2h))

    attn_ref, attended_ref = reference(embedded, conved, encoder_conved,
                                       encoder_combined, w_h2e, b_h2e,
                                       w_e2h, b_e2h)

    assert attn.shape == (B, T, S) and attended.shape == (B, H, T)
    assert jnp.allclose(attn, attn_ref, atol=1e-5, rtol=1e-5)
    assert jnp.allclose(attended, attended_ref, atol=1e-5, rtol=1e-5)

    print("KERNEL_OK")
</pallas_src>

<mosaic_0001>
module attributes {stable_mosaic.version = 11 : i64} {
  func.func @attention_kernel(%arg0: i32, %arg1: memref<1x8x32xf32, #tpu.memory_space<vmem>>, %arg2: memref<1x64x8xf32, #tpu.memory_space<vmem>>, %arg3: memref<1x16x32xf32, #tpu.memory_space<vmem>>, %arg4: memref<1x16x32xf32, #tpu.memory_space<vmem>>, %arg5: memref<64x32xf32, #tpu.memory_space<vmem>>, %arg6: memref<1x32xf32, #tpu.memory_space<vmem>>, %arg7: memref<32x64xf32, #tpu.memory_space<vmem>>, %arg8: memref<64x1xf32, #tpu.memory_space<vmem>>, %arg9: memref<1x8x16xf32, #tpu.memory_space<vmem>>, %arg10: memref<1x64x8xf32, #tpu.memory_space<vmem>>) attributes {dimension_semantics = [#tpu.dimension_semantics<parallel>], iteration_bounds = array<i64: 2>, scalar_prefetch = 0 : i64, scratch_operands = 0 : i64, tpu.core_type = #tpu.core_type<tc>, window_params = [{transform_indices = @transform_0, window_bounds = array<i64: 1, 8, 32>}, {transform_indices = @transform_1, window_bounds = array<i64: 1, 64, 8>}, {transform_indices = @transform_2, window_bounds = array<i64: 1, 16, 32>}, {transform_indices = @transform_3, window_bounds = array<i64: 1, 16, 32>}, {pipeline_mode = #tpu.pipeline_mode<synchronous>, transform_indices = @transform_4, window_bounds = array<i64: 64, 32>}, {pipeline_mode = #tpu.pipeline_mode<synchronous>, transform_indices = @transform_5, window_bounds = array<i64: 1, 32>}, {pipeline_mode = #tpu.pipeline_mode<synchronous>, transform_indices = @transform_6, window_bounds = array<i64: 32, 64>}, {pipeline_mode = #tpu.pipeline_mode<synchronous>, transform_indices = @transform_7, window_bounds = array<i64: 64, 1>}, {transform_indices = @transform_8, window_bounds = array<i64: 1, 8, 16>}, {transform_indices = @transform_9, window_bounds = array<i64: 1, 64, 8>}]} {
    %c0 = arith.constant 0 : index
    %c0_0 = arith.constant 0 : index
    %c0_1 = arith.constant 0 : index
    %0 = vector.load %arg1[%c0, %c0_0, %c0_1] : memref<1x8x32xf32, #tpu.memory_space<vmem>>, vector<1x8x32xf32>
    %1 = vector.shape_cast %0 : vector<1x8x32xf32> to vector<8x32xf32>
    %c0_2 = arith.constant 0 : index
    %c0_3 = arith.constant 0 : index
    %c0_4 = arith.constant 0 : index
    %2 = vector.load %arg2[%c0_2, %c0_3, %c0_4] : memref<1x64x8xf32, #tpu.memory_space<vmem>>, vector<1x64x8xf32>
    %3 = vector.shape_cast %2 : vector<1x64x8xf32> to vector<64x8xf32>
    %c0_5 = arith.constant 0 : index
    %c0_6 = arith.constant 0 : index
    %c0_7 = arith.constant 0 : index
    %4 = vector.load %arg3[%c0_5, %c0_6, %c0_7] : memref<1x16x32xf32, #tpu.memory_space<vmem>>, vector<1x16x32xf32>
    %5 = vector.shape_cast %4 : vector<1x16x32xf32> to vector<16x32xf32>
    %c0_8 = arith.constant 0 : index
    %c0_9 = arith.constant 0 : index
    %c0_10 = arith.constant 0 : index
    %6 = vector.load %arg4[%c0_8, %c0_9, %c0_10] : memref<1x16x32xf32, #tpu.memory_space<vmem>>, vector<1x16x32xf32>
    %7 = vector.shape_cast %6 : vector<1x16x32xf32> to vector<16x32xf32>
    %c0_11 = arith.constant 0 : index
    %c0_12 = arith.constant 0 : index
    %8 = vector.load %arg5[%c0_11, %c0_12] : memref<64x32xf32, #tpu.memory_space<vmem>>, vector<64x32xf32>
    %c0_13 = arith.constant 0 : index
    %c0_14 = arith.constant 0 : index
    %9 = vector.load %arg6[%c0_13, %c0_14] : memref<1x32xf32, #tpu.memory_space<vmem>>, vector<1x32xf32>
    %c0_15 = arith.constant 0 : index
    %c0_16 = arith.constant 0 : index
    %10 = vector.load %arg7[%c0_15, %c0_16] : memref<32x64xf32, #tpu.memory_space<vmem>>, vector<32x64xf32>
    %c0_17 = arith.constant 0 : index
    %c0_18 = arith.constant 0 : index
    %11 = vector.load %arg8[%c0_17, %c0_18] : memref<64x1xf32, #tpu.memory_space<vmem>>, vector<64x1xf32>
    %cst = arith.constant dense<0.000000e+00> : vector<8x32xf32>
    %12 = tpu.matmul %3, %8, %cst {dimension_numbers = #tpu.dot_dimension_numbers<[0], [0], [1], [1], [0, 1, 1, 1], [], []>} : vector<64x8xf32>, vector<64x32xf32>, vector<8x32xf32> -> vector<8x32xf32>
    %13 = vector.broadcast %9 : vector<1x32xf32> to vector<8x32xf32>
    %14 = arith.addf %12, %13 : vector<8x32xf32>
    %cst_19 = arith.constant 0.707106769 : f32
    %15 = vector.broadcast %cst_19 : f32 to vector<8x32xf32>
    %16 = arith.mulf %1, %15 : vector<8x32xf32>
    %17 = arith.addf %14, %16 : vector<8x32xf32>
    %cst_20 = arith.constant dense<0.000000e+00> : vector<8x16xf32>
    %18 = tpu.matmul %17, %5, %cst_20 {dimension_numbers = #tpu.dot_dimension_numbers<[1], [1], [0], [0], [0, 0, 1, 0], [], []>} : vector<8x32xf32>, vector<16x32xf32>, vector<8x16xf32> -> vector<8x16xf32>
    %cst_21 = arith.constant dense<0xFF800000> : vector<8xf32>
    %19 = vector.multi_reduction <maximumf>, %18, %cst_21 [1] : vector<8x16xf32> to vector<8xf32>
    %20 = vector.shape_cast %19 : vector<8xf32> to vector<8x1xf32>
    %21 = vector.broadcast %20 : vector<8x1xf32> to vector<8x16xf32>
    %22 = arith.subf %18, %21 : vector<8x16xf32>
    %23 = math.exp %22 : vector<8x16xf32>
    %cst_22 = arith.constant dense<0.000000e+00> : vector<8xf32>
    %24 = vector.multi_reduction <add>, %23, %cst_22 [1] : vector<8x16xf32> to vector<8xf32>
    %25 = vector.shape_cast %24 : vector<8xf32> to vector<8x1xf32>
    %26 = tpu.reciprocal %25 : vector<8x1xf32> -> vector<8x1xf32>
    %27 = vector.broadcast %26 : vector<8x1xf32> to vector<8x16xf32>
    %28 = arith.mulf %23, %27 : vector<8x16xf32>
    %c0_23 = arith.constant 0 : index
    %c0_24 = arith.constant 0 : index
    %c0_25 = arith.constant 0 : index
    %29 = vector.load %arg9[%c0_23, %c0_24, %c0_25] : memref<1x8x16xf32, #tpu.memory_space<vmem>>, vector<1x8x16xf32>
    %30 = vector.shape_cast %29 : vector<1x8x16xf32> to vector<8x16xf32>
    %31 = vector.shape_cast %28 : vector<8x16xf32> to vector<1x8x16xf32>
    tpu.vector_store %arg9[%c0_23, %c0_24, %c0_25], %31 {strides = array<i32>} : memref<1x8x16xf32, #tpu.memory_space<vmem>>, vector<1x8x16xf32>,
    %cst_26 = arith.constant dense<0.000000e+00> : vector<32x8xf32>
    %32 = tpu.matmul %7, %28, %cst_26 {dimension_numbers = #tpu.dot_dimension_numbers<[0], [1], [1], [0], [0, 1, 1, 0], [], []>} : vector<16x32xf32>, vector<8x16xf32>, vector<32x8xf32> -> vector<32x8xf32>
    %cst_27 = arith.constant dense<0.000000e+00> : vector<64x8xf32>
    %33 = tpu.matmul %10, %32, %cst_27 {dimension_numbers = #tpu.dot_dimension_numbers<[0], [0], [1], [1], [0, 1, 1, 1], [], []>} : vector<32x64xf32>, vector<32x8xf32>, vector<64x8xf32> -> vector<64x8xf32>
    %34 = vector.broadcast %11 : vector<64x1xf32> to vector<64x8xf32>
    %35 = arith.addf %33, %34 : vector<64x8xf32>
    %cst_28 = arith.constant 0.707106769 : f32
    %36 = vector.broadcast %cst_28 : f32 to vector<64x8xf32>
    %37 = arith.mulf %3, %36 : vector<64x8xf32>
    %38 = arith.addf %37, %35 : vector<64x8xf32>
    %c0_29 = arith.constant 0 : index
    %c0_30 = arith.constant 0 : index
    %c0_31 = arith.constant 0 : index
    %39 = vector.load %arg10[%c0_29, %c0_30, %c0_31] : memref<1x64x8xf32, #tpu.memory_space<vmem>>, vector<1x64x8xf32>
    %40 = vector.shape_cast %39 : vector<1x64x8xf32> to vector<64x8xf32>
    %41 = vector.shape_cast %38 : vector<64x8xf32> to vector<1x64x8xf32>
    tpu.vector_store %arg10[%c0_29, %c0_30, %c0_31], %41 {strides = array<i32>} : memref<1x64x8xf32, #tpu.memory_space<vmem>>, vector<1x64x8xf32>,
    return
  }
  func.func @transform_0(%arg0: i32) -> (i32, i32, i32) {
    %c0_i32 = arith.constant 0 : i32
    %c0_i32_0 = arith.constant 0 : i32
    %c0_i32_1 = arith.constant 0 : i32
    return %arg0, %c0_i32, %c0_i32_0 : i32, i32, i32
  }
  func.func @transform_1(%arg0: i32) -> (i32, i32, i32) {
    %c0_i32 = arith.constant 0 : i32
    %c0_i32_0 = arith.constant 0 : i32
    %c0_i32_1 = arith.constant 0 : i32
    return %arg0, %c0_i32, %c0_i32_0 : i32, i32, i32
  }
  func.func @transform_2(%arg0: i32) -> (i32, i32, i32) {
    %c0_i32 = arith.constant 0 : i32
    %c0_i32_0 = arith.constant 0 : i32
    %c0_i32_1 = arith.constant 0 : i32
    return %arg0, %c0_i32, %c0_i32_0 : i32, i32, i32
  }
  func.func @transform_3(%arg0: i32) -> (i32, i32, i32) {
    %c0_i32 = arith.constant 0 : i32
    %c0_i32_0 = arith.constant 0 : i32
    %c0_i32_1 = arith.constant 0 : i32
    return %arg0, %c0_i32, %c0_i32_0 : i32, i32, i32
  }
  func.func @transform_4(%arg0: i32) -> (i32, i32) {
    %c0_i32 = arith.constant 0 : i32
    %c0_i32_0 = arith.constant 0 : i32
    %c0_i32_1 = arith.constant 0 : i32
    return %c0_i32, %c0_i32_0 : i32, i32
  }
  func.func @transform_5(%arg0: i32) -> (i32, i32) {
    %c0_i32 = arith.constant 0 : i32
    %c0_i32_0 = arith.constant 0 : i32
    %c0_i32_1 = arith.constant 0 : i32
    return %c0_i32, %c0_i32_0 : i32, i32
  }
  func.func @transform_6(%arg0: i32) -> (i32, i32) {
    %c0_i32 = arith.constant 0 : i32
    %c0_i32_0 = arith.constant 0 : i32
    %c0_i32_1 = arith.constant 0 : i32
    return %c0_i32, %c0_i32_0 : i32, i32
  }
  func.func @transform_7(%arg0: i32) -> (i32, i32) {
    %c0_i32 = arith.constant 0 : i32
    %c0_i32_0 = arith.constant 0 : i32
    %c0_i32_1 = arith.constant 0 : i32
    return %c0_i32, %c0_i32_0 : i32, i32
  }
  func.func @transform_8(%arg0: i32) -> (i32, i32, i32) {
    %c0_i32 = arith.constant 0 : i32
    %c0_i32_0 = arith.constant 0 : i32
    %c0_i32_1 = arith.constant 0 : i32
    return %arg0, %c0_i32, %c0_i32_0 : i32, i32, i32
  }
  func.func @transform_9(%arg0: i32) -> (i32, i32, i32) {
    %c0_i32 = arith.constant 0 : i32
    %c0_i32_0 = arith.constant 0 : i32
    %c0_i32_1 = arith.constant 0 : i32
    return %arg0, %c0_i32, %c0_i32_0 : i32, i32, i32
  }
}

</mosaic_0001>

<bundles_post_ra>
// kernel: tpu_custom_call.1
= control target key start
LH: loop header
LB: loop body
LE: loop exit
PB: predicated region body
PF: predicated region fallthrough
CT: control target
= control target key end

     0   :  { %s1697_s0 = inlined_call_operand.vmem [shape: f32[2,8,32], index: 0, kind: input, shape index: {}]   ;;  %s1698_s1 = inlined_call_operand.vmem [shape: f32[2,64,8], index: 1, kind: input, shape index: {}]   ;;  %s1699_s2 = inlined_call_operand.vmem [shape: f32[2,16,32], index: 2, kind: input, shape index: {}]   ;;  %s1700_s3 = inlined_call_operand.vmem [shape: f32[2,16,32], index: 3, kind: input, shape index: {}]   ;;  %s1701_s4 = inlined_call_operand.vmem [shape: f32[64,32], index: 4, kind: input, shape index: {}]   ;;  %s1702_s5 = inlined_call_operand.vmem [shape: f32[1,32], index: 5, kind: input, shape index: {}]   ;;  %s1703_s6 = inlined_call_operand.vmem [shape: f32[32,64], index: 6, kind: input, shape index: {}]   ;;  %s1704_s7 = inlined_call_operand.vmem [shape: f32[64,1], index: 7, kind: input, shape index: {}]   ;;  %s1705_s8 = inlined_call_operand.hbm [shape: f32[2,8,16], index: 8, kind: output, shape index: {0}]   ;;  %s1706_s9 = inlined_call_operand.vmem [shape: f32[2,64,8], index: 9, kind: output, shape index: {1}]  }
   0x1   :  { %1710 = sst [smem:[#allocation5_spill]] %s1697_s0 }
   0x2   :  { %1711 = sst [smem:[#allocation6_spill]] %s1698_s1 }
   0x3   :  { %15 = vsyncpa [#allocation3], 0 }
   0x4   :  { %17 = vsyncpa [#allocation3 + $0x1], 0  ;;  %s1429_s30 = smov 0   ;;  %s1431_s10 = smov 0  }
   0x5   :  { %s1433_s11 = smov 0   ;;  %s1435_s12 = smov 0  }
   0x6 LB: > { %s1450_s13 = sadd.s32 4294967295, %s1373_s12   ;;  %s1142_s14 = sadd.s32 4294967294, %s1373_s12   ;;  %s1373_s12 = sphi %s1435_s12, %s1722_s12   ;;  %s1369_s11 = sphi %s1433_s11, %s1721_s11   ;;  %s1365_s10 = sphi %s1431_s10, %s1720_s10   ;;  %s1361_s30 = sphi %s1429_s30, %s1719_s30  }
   0x7   : > { %s1454_s15 = sadd.s32 1, %s1373_s12   ;;  %s218_s16 = sadd.s32 1, %s1369_s11 }
   0x8   : > { %s215_s17 = ssub.s32 %s1373_s12, %s1454_s15  ;;  %p228_p0 = scmp.ne.s32.totalorder %s1369_s11, %s1365_s10 }
   0x9   : > { %p216_p1 = scmp.eq.s32.totalorder %s215_s17, 0  ;;  %p229_p2 = scmp.eq.s32.totalorder %s1450_s13, 1 }
   0xa   : > { %p234_p3 = scmp.ne.s32.totalorder %s1365_s10, %s1361_s30  ;;  %p235_p4 = scmp.eq.s32.totalorder %s1142_s14, 1 }
   0xb   : > { %s1465_s18 = scalar_select %p216_p1, %s1369_s11, %s218_s16  }
   0xc   : > { %p1467_p5 = por %p229_p2, %p228_p0  ;;  %p1471_p6 = por %p235_p4, %p234_p3 }
   0xd   : > { %p1145_p7 = scmp.ge.s32.totalorder %s1373_s12, 1  ;;  %p322_p8 = scmp.lt.s32.totalorder %s1373_s12, 3 }
   0xf   : > { %p323_p9 = pnand %p1145_p7, %p322_p8 }
  0x10   : > { %p377_p10 = scmp.lt.s32.totalorder (!%p323_p9), %s1450_s13, 1  ;;  %s1714_s1 = sld [smem:[#allocation6_spill]] (!%p323_p9) }
  0x11   : > { %326 = sbr.rel (%p323_p9) target bundleno = 1301 (0x515), region = 52  ;;  %s1715_s0 = sld [smem:[#allocation5_spill]] (!%p323_p9) }
  0x12   : > { %s1708_s23 = sand.u32 (!%p323_p9), 1, %s1365_s10  }
  0x16   : > { %v421_v0 = vld [vmem:[%s1701_s4 + $0x38] sm:$0xff]  ;;  %v1375_v1 = vmov 0.0   ;;  %v420_v2 = vld [vmem:[%s1701_s4 + $0x30] sm:$0xff]  ;;  %vm1376_vm0 = vmmov 0   ;;  %s1486_s25 = scalar_select %p377_p10, %s1450_s13, 1  ;;  %v419_v3 = vld [vmem:[%s1701_s4 + $0x28] sm:$0xff] }
  0x17   : > { %1211 = vmatprep.subr.mxu0 %v1375_v1  ;;  %1227 = vmatprep.mubr.msk.f32.mxu0 %vm1376_vm0, %v1375_v1  ;;  %v418_v4 = vld [vmem:[%s1701_s4 + $0x20] sm:$0xff]  ;;  %v417_v6 = vld [vmem:[%s1701_s4 + $0x18] sm:$0xff]  ;;  %v416_v8 = vld [vmem:[%s1701_s4 + $0x10] sm:$0xff]  ;;  %vm473_vm1 = vcmask 523264   ;;  %vm549_vm2 = vcmask 261120   ;;  %vm629_vm3 = vcmask 130048  }
  0x18   : > { %1212 = vmatpush3.msra.mxu0 %v421_v0  ;;  %s1707_s28 = sshll.u32 %s1486_s25, 6  ;;  %v415_v9 = vld [vmem:[%s1701_s4 + $0x8] sm:$0xff]  ;;  %v414_v11 = vld [vmem:[%s1701_s4] sm:$0xff]  ;;  %s1179_s21 = sshll.u32 %s1486_s25, 4  ;;  %v425_v39 = vld [vmem:[%s1703_s6 + $0x10] sm:$0xff]  ;;  %v1377_v51 = vmov 0  }
  0x19   : > { %1213 = vmatprep.subr.mxu0 %v1375_v1  ;;  %s1497_s16 = scalar_lea.vmem %s1714_s1, %s1707_s28  ;;  %s390_s24 = scalar_lea.vmem %s1699_s2, %s1179_s21  ;;  %v1156_v21 = vld [vmem:[%s1702_s5] ss:$0 sm:$0xff]  ;;  %v424_v38 = vld [vmem:[%s1703_s6 + $0x8] sm:$0xff]  ;;  %v426_v40 = vld [vmem:[%s1703_s6 + $0x18] sm:$0xff] }
  0x1a   : > { %1214 = vmatpush3.msra.mxu0 %v420_v2  ;;  %v1503_v5 = vld [vmem:[%s1497_s16] sm:$0xff]  ;;  %v1510_v7 = vld [vmem:[%s1497_s16 + $0x8] sm:$0xff]  ;;  %v1520_v10 = vld [vmem:[%s1497_s16 + $0x10] sm:$0xff]  ;;  %s1175_s28 = sshll.u32 %s1450_s13, 7 }
  0x1b   : > { %1215 = vmatprep.subr.mxu0 %v1375_v1  ;;  %441 = vxpose.xlu0.b32.start [1/8] (short) (narrow) %v1503_v5, 8  ;;  %v1527_v12 = vld [vmem:[%s1497_s16 + $0x18] sm:$0xff]  ;;  %v1531_v13 = vld [vmem:[%s1497_s16 + $0x20] sm:$0xff]  ;;  %v1535_v14 = vld [vmem:[%s1497_s16 + $0x28] sm:$0xff]  ;;  %s1017_s27 = scalar_lea.hbm %s1705_s8, %s1175_s28 }
  0x1c   : > { %1216 = vmatpush3.msra.mxu0 %v419_v3  ;;  %v1539_v15 = vld [vmem:[%s1497_s16 + $0x30] sm:$0xff]  ;;  %v1543_v16 = vld [vmem:[%s1497_s16 + $0x38] sm:$0xff]  ;;  %v411_v17 = vld [vmem:[%s390_s24 + $0x8] sm:$0xff]  ;;  %s1147_s16 = sshll.u32 %s1486_s25, 3 }
  0x1d   : > { %1217 = vmatprep.subr.mxu0 %v1375_v1  ;;  %v410_v19 = vld [vmem:[%s390_s24] sm:$0xff]  ;;  %s380_s29 = scalar_lea.vmem %s1715_s0, %s1147_s16  ;;  %s395_s24 = scalar_lea.vmem %s1700_s3, %s1179_s21  ;;  %v428_v50 = vld [vmem:[%s1704_s7 + $0x8] sm:$0xff]  ;;  %v430_v52 = vld [vmem:[%s1704_s7 + $0x18] sm:$0xff] }
  0x1e   : > { %1218 = vmatpush3.msra.mxu0 %v418_v4  ;;  %v401_v20 = vld [vmem:[%s380_s29] sm:$0xff]  ;;  %v413_v36 = vld [vmem:[%s395_s24 + $0x8] sm:$0xff]  ;;  %v429_v53 = vld [vmem:[%s1704_s7 + $0x10] sm:$0xff]  ;;  %s1717_s29 = sand.u32 1, %s1365_s10   ;;  %s1378_s21 = smov [#allocation2]  }
  0x1f   : > { %1219 = vmatprep.subr.mxu0 %v1375_v1  ;;  %442 = vxpose.xlu0.b32.cont [2/8] (short) (narrow) %v1510_v7, 8  ;;  %v547_v22 = vmul.f32 0.70710677, %v401_v20  ;;  %v412_v35 = vld [vmem:[%s395_s24] sm:$0xff]  ;;  %s1585_s24 = sshll.u32 %s1708_s23, 3  ;;  %v432_v54 = vld [vmem:[%s1704_s7 + $0x28] sm:$0xff] }
  0x20   : > { %1220 = vmatpush3.msra.mxu0 %v417_v6  ;;  %v423_v37 = vld [vmem:[%s1703_s6] sm:$0xff]  ;;  %s1709_s16 = scalar_lea.vmem [#allocation2], %s1585_s24  ;;  %v434_v56 = vld [vmem:[%s1704_s7 + $0x38] sm:$0xff]  ;;  %v433_v57 = vld [vmem:[%s1704_s7 + $0x30] sm:$0xff]  ;;  %s1716_s23 = scalar_lea.vmem [#allocation2], %s1585_s24 }
  0x21   : > { %1221 = vmatprep.subr.mxu0 %v1375_v1  ;;  %v427_v49 = vld [vmem:[%s1704_s7] sm:$0xff]  ;;  %s1001_s14 = scalar_lea.sflag [#allocation3], %s1717_s29  ;;  %s1317_s0 = sshll.u32 %s1378_s21, 4  ;;  %s1318_s0 = int_to_ptr.vmem [resolvable:$false] %s1317_s0 }
  0x22   : > { %1222 = vmatpush3.msra.mxu0 %v416_v8  ;;  %v431_v55 = vld [vmem:[%s1704_s7 + $0x20] sm:$0xff]  ;;  %s1319_s1 = scalar_lea.vmem %s1318_s0, 256 }
  0x23   : > { %1223 = vmatprep.subr.mxu0 %v1375_v1  ;;  %443 = vxpose.xlu0.b32.cont [3/8] (short) (narrow) %v1520_v10, 8 }
  0x24   : > { %1224 = vmatpush3.msra.mxu0 %v415_v9 }
  0x25   : > { %1225 = vmatprep.subr.mxu0 %v1375_v1 }
  0x26   : > { %1226 = vmatpush3.msra.mxu0 %v414_v11 }
  0x27   : > { %1230 = vmatprep.subr.mxu0 %v1375_v1  ;;  %444 = vxpose.xlu0.b32.cont [4/8] (short) (narrow) %v1527_v12, 8 }
  0x2b   : > { %445 = vxpose.xlu0.b32.cont [5/8] (short) (narrow) %v1531_v13, 8 }
  0x2f   : > { %446 = vxpose.xlu0.b32.cont [6/8] (short) (narrow) %v1535_v14, 8 }
  0x33   : > { %447 = vxpose.xlu0.b32.cont [7/8] (short) (narrow) %v1539_v15, 8 }
  0x37   : > { %448 = vxpose.xlu0.b32.end [8/8] (short) (narrow) %v1543_v16, 8 }
  0x3b   : > { %814 = vxpose.xlu0.b32.start [1/4] (short) (narrow) %v423_v37, 64 }
  0x3f   : > { %815 = vxpose.xlu0.b32.cont [2/4] (short) (narrow) %v424_v38, 64 }
  0x43   : > { %816 = vxpose.xlu0.b32.cont [3/4] (short) (narrow) %v425_v39, 64 }
  0x47   : > { %817 = vxpose.xlu0.b32.end [4/4] (short) (narrow) %v426_v40, 64 }
  0x70   : > { %1307 = vset.pattern.permute.xlu0 %v1377_v51 }
  0x80   : > { %776 = vperm.xlu0 %1307, %v427_v49  }
  0x84   : > { %791 = vperm.xlu0 %1307, %v430_v52  }
  0x88   : > { %801 = vperm.xlu0 %1307, %v432_v54  }
  0x8c   : > { %811 = vperm.xlu0 %1307, %v434_v56  }
  0x97   : > { %v457_v18 = vpop.trf.xlu0 }
  0x98   : > { %1228 = vmatmul.mubr.msk.f32.vlgmr.msra.gmra.mxu0 %vm473_vm1, %v457_v18 }
  0x99   : > { %1231 = vmatpush3.xpose.msk.msra.mxu0 %vm549_vm2, %v411_v17  ;;  %1234 = vmatprep.mubr.msk.f32.mxu0 %vm1376_vm0, %v1375_v1 }
  0x9a   : > { %1232 = vmatprep.subr.mxu0 %v1375_v1 }
  0x9d   : > { %1233 = vmatpush3.xpose.msk.msra.mxu0 %vm549_vm2, %v410_v19 }
  0xb7   : > { %v830_v47 = vpop.trf.xlu0 }
  0xbb   : > { %v831_v58 = vpop.trf.xlu0 }
  0xbf   : > { %v832_v59 = vpop.trf.xlu0 }
  0xc3   : > { %v833_v61 = vpop.trf.xlu0 }
  0xc7   : > { %v834_v0 = vpop.trf.xlu0 }
  0xcb   : > { %v835_v2 = vpop.trf.xlu0 }
  0xcf   : > { %v836_v3 = vpop.trf.xlu0 }
  0xd3   : > { %v837_v4 = vpop.trf.xlu0 }
 0x158   : > { %v543_v23 = vpop.f32.mrf.mxu0 }
 0x159   : > { %v544_v24 = vadd.f32 %v1156_v21, %v543_v23 }
 0x15a   : > { %v1229_v25 = vpop.f32.mrf.mxu0 }
 0x15b   : > { %v548_v26 = vadd.f32 %v547_v22, %v544_v24 }
 0x15d   : > { %1235 = vmatmul.mubr.msk.f32.vlgmr.msra.gmra.mxu0 %vm549_vm2, %v548_v26 }
 0x21d   : > { %v625_v27 = vpop.f32.mrf.mxu0 }
 0x21e   : > { %v630_v28 = vsel %vm629_vm3, %v625_v27, -inf }
 0x21f   : > { %631 = vmax.xlane.f32.xlu1 %v630_v28  ;;  %v1236_v29 = vpop.f32.mrf.mxu0 }
 0x2a8   : > { %v632_v30 = vpop.xlane.xlu1 %631 }
 0x2a9   : > { %v633_v31 = vsub.f32 %v625_v27, %v632_v30 }
 0x2ab   : > { %v634_v32 = vmul.f32 1.442695, %v633_v31 }
 0x2ad   : > { %1309 = vpow2.f32 %v634_v32 }
 0x2ba   : > { %v1310_v33 = vpop.eup %1309 }
 0x2bb   : > { %v636_v34 = vsel %vm629_vm3, %v1310_v33, 0.0 }
 0x2bc   : > { %637 = vadd.xlane.f32.xlu1 %v636_v34 }
 0x2ef   : > { %642 = vxpose.xlu1.b32.start [1/2] (short) (narrow) %v412_v35, 32 }
 0x2f3   : > { %643 = vxpose.xlu1.b32.end [2/2] (short) (narrow) %v413_v36, 32 }
 0x311   : > { %1308 = vset.pattern.permute.xlu1 %v1377_v51 }
 0x319   : > { %781 = vperm.xlu1 %1308, %v428_v50  }
 0x31d   : > { %786 = vperm.xlu1 %1308, %v429_v53  }
 0x321   : > { %796 = vperm.xlu1 %1308, %v431_v55  }
 0x325   : > { %806 = vperm.xlu1 %1308, %v433_v57  }
 0x345   : > { %v638_v41 = vpop.xlane.xlu1 %637 }
 0x346   : > { %1311 = vrcp.f32 %v638_v41 }
 0x353   : > { %v1312_v42 = vpop.eup %1311 }
 0x354   : > { %v640_v43 = vmul.f32 %v1312_v42, %v1310_v33 }
 0x356   : > { %1237 = vmatprep.subr.msk.mxu1 %vm629_vm3, %v640_v43  ;;  %641 = vst.msk [vmem:[%s1709_s16] sm:$0xff] %vm629_vm3, %v640_v43  ;;  %s1019_s16 = sshll.u32 %s1716_s23, 4  ;;  %s1020_s16 = int_to_ptr.vmem [resolvable:$true] %s1019_s16 }
 0x357   : > { %1238 = vmatpush3.xpose.msk.msra.mxu1 %vm629_vm3, %v640_v43  ;;  %s1313_s17 = scalar_lea.vmem %s1020_s16, 128  ;;  %p1320_p0 = scmp.lt.s32.totalorder %s1020_s16, %s1318_s0 }
 0x358   : > { %p1314_p11 = scmp.ne.s32.totalorder %s1020_s16, %s1313_s17  ;;  %p1321_p1 = scmp.lt.s32.totalorder %s1319_s1, %s1313_s17 }
 0x35a   : > { %p1315_p12 = pnand %p1314_p11, %p1467_p5  ;;  %p1322_p2 = por %p1321_p1, %p1320_p0 }
 0x35c   : > { %p1316_p13 = pneg %p1315_p12 }
 0x35e   : > { %p1323_p3 = pnand %p1322_p2, %p1316_p13 }
 0x36b   : > { %v658_v44 = vpop.trf.xlu1 }
 0x36c   : > { %1239 = vmatprep.mubr.msk.f32.mxu1 %vm629_vm3, %v658_v44 }
 0x36f   : > { %v659_v45 = vpop.trf.xlu1 }
 0x370   : > { %1240 = vmatmul.mubr.msk.f32.vlgmr.msra.gmra.mxu1 %vm629_vm3, %v659_v45 }
 0x373   : > { %v660_v46 = vpop.trf.xlu1 }
 0x374   : > { %1242 = vmatprep.mubr.msk.f32.mxu1 %vm629_vm3, %v660_v46 }
 0x377   : > { %v661_v48 = vpop.trf.xlu1 }
 0x378   : > { %1243 = vmatmul.mubr.msk.f32.gmra.mxu1 %vm629_vm3, %v661_v48 }
 0x379   : > { %1253 = vmatprep.mubr.msk.f32.mxu1 %vm549_vm2, %v830_v47 }
 0x430   : > { %v1241_v60 = vpop.f32.mrf.mxu1 }
 0x432   : > { %v755_v62 = vpop.f32.mrf.mxu1 }
 0x438   : > { %v1244_v63 = vpop.f32.mrf.mxu1 }
 0x439   : > { %1245 = vmatprep.subr.mxu1 %v1244_v63 }
 0x43a   : > { %v765_v1 = vpop.f32.mrf.mxu1  ;;  %1246 = vmatpush3.msra.mxu1 %v1244_v63 }
 0x43b   : > { %1247 = vmatprep.subr.mxu1 %v765_v1 }
 0x43c   : > { %1248 = vmatpush3.msra.mxu1 %v765_v1 }
 0x43d   : > { %1249 = vmatprep.subr.mxu1 %v1241_v60 }
 0x43e   : > { %1250 = vmatpush3.msra.mxu1 %v1241_v60 }
 0x43f   : > { %1251 = vmatprep.subr.mxu1 %v755_v62 }
 0x440   : > { %1252 = vmatpush3.msra.mxu1 %v755_v62 }
 0x441   : > { %1254 = vmatmul.mubr.msk.f32.vlgmr.msra.gmra.mxu1 %vm549_vm2, %v831_v58 }
 0x442   : > { %1256 = vmatprep.mubr.msk.f32.mxu1 %vm549_vm2, %v832_v59 }
 0x445   : > { %1257 = vmatmul.mubr.msk.f32.gmra.mxu1 %vm549_vm2, %v833_v61 }
 0x446   : > { %1259 = vmatprep.mubr.msk.f32.mxu1 %vm549_vm2, %v834_v0 }
 0x449   : > { %1260 = vmatmul.mubr.msk.f32.gmra.mxu1 %vm549_vm2, %v835_v2 }
 0x44a   : > { %1262 = vmatprep.mubr.msk.f32.mxu1 %vm549_vm2, %v836_v3 }
 0x44d   : > { %1263 = vmatmul.mubr.msk.f32.gmra.mxu1 %vm549_vm2, %v837_v4 }
 0x44e   : > { %1326 = shalt.err (!%p1323_p3)
}
 0x44f   : > { %s1327_s13 = scalar_lea.hbm %s1017_s27, 128  ;;  %s1331_s23 = scalar_lea.hbm %s1705_s8, 256 }
 0x450   : > { %p1328_p4 = scmp.ne.s32.totalorder %s1017_s27, %s1327_s13  ;;  %p1332_p9 = scmp.lt.s32.totalorder %s1017_s27, %s1705_s8 }
 0x451   : > { %p1333_p10 = scmp.lt.s32.totalorder %s1331_s23, %s1327_s13 }
 0x452   : > { %p1329_p7 = pnand %p1328_p4, %p1467_p5 }
 0x453   : > { %p1334_p11 = por %p1333_p10, %p1332_p9 }
 0x454   : > { %p1330_p8 = pneg %p1329_p7 }
 0x456   : > { %p1335_p12 = pnand %p1334_p11, %p1330_p8 }
 0x458   : > { %1338 = shalt.err (!%p1335_p12)
}
 0x459   : > { %1265 = dma.vmem_to_hbm [thread:$0]  (%p1467_p5), %s1020_s16, 128, %s1017_s27, %s1001_s14   ;;  %v777_v6 = vpop.permute.xlu0 %776  ;;  %v782_v8 = vpop.permute.xlu1 %781  ;;  %v976_v9 = vmul.f32 0.70710677, %v1510_v7  ;;  %v975_v18 = vmul.f32 0.70710677, %v1503_v5  ;;  %vm991_vm4 = vcmask 64512  }
 0x45a   : > { %s1718_s0 = sshll.u32 %s1486_s25, 6  ;;  %v978_v22 = vmul.f32 0.70710677, %v1527_v12  ;;  %v977_v5 = vmul.f32 0.70710677, %v1520_v10 }
 0x45b   : > { %s1656_s17 = scalar_lea.vmem %s1706_s9, %s1718_s0  ;;  %v980_v29 = vmul.f32 0.70710677, %v1535_v14  ;;  %v979_v33 = vmul.f32 0.70710677, %v1531_v13  ;;  %v982_v36 = vmul.f32 0.70710677, %v1543_v16 }
 0x45c   : > { %v981_v40 = vmul.f32 0.70710677, %v1539_v15 }
 0x45d   : > { %v792_v11 = vpop.permute.xlu0 %791  ;;  %v787_v20 = vpop.permute.xlu1 %786 }
 0x461   : > { %v802_v27 = vpop.permute.xlu0 %801  ;;  %v797_v31 = vpop.permute.xlu1 %796 }
 0x465   : > { %v812_v38 = vpop.permute.xlu0 %811  ;;  %v807_v42 = vpop.permute.xlu1 %806 }
 0x501   : > { %v1255_v17 = vpop.f32.mrf.mxu1 }
 0x502   : > { %v942_v19 = vadd.f32 %v1255_v17, %v782_v8 }
 0x503   : > { %v936_v21 = vpop.f32.mrf.mxu1 }
 0x504   : > { %v984_v23 = vadd.f32 %v976_v9, %v942_v19  ;;  %v937_v7 = vadd.f32 %v936_v21, %v777_v6 }
 0x505   : > { %v1258_v24 = vpop.f32.mrf.mxu1 }
 0x506   : > { %993 = vst.msk [vmem:[%s1656_s17 + $0x8] sm:$0xff] %vm991_vm4, %v984_v23  ;;  %v983_v25 = vadd.f32 %v975_v18, %v937_v7  ;;  %v952_v26 = vadd.f32 %v1258_v24, %v792_v11 }
 0x507   : > { %v946_v28 = vpop.f32.mrf.mxu1 }
 0x508   : > { %992 = vst.msk [vmem:[%s1656_s17] sm:$0xff] %vm991_vm4, %v983_v25  ;;  %v986_v30 = vadd.f32 %v978_v22, %v952_v26  ;;  %v947_v12 = vadd.f32 %v946_v28, %v787_v20 }
 0x509   : > { %v1261_v32 = vpop.f32.mrf.mxu1 }
 0x50a   : > { %995 = vst.msk [vmem:[%s1656_s17 + $0x18] sm:$0xff] %vm991_vm4, %v986_v30  ;;  %v985_v10 = vadd.f32 %v977_v5, %v947_v12  ;;  %v962_v34 = vadd.f32 %v1261_v32, %v802_v27 }
 0x50b   : > { %v956_v35 = vpop.f32.mrf.mxu1 }
 0x50c   : > { %994 = vst.msk [vmem:[%s1656_s17 + $0x10] sm:$0xff] %vm991_vm4, %v985_v10  ;;  %v988_v14 = vadd.f32 %v980_v29, %v962_v34  ;;  %v957_v37 = vadd.f32 %v956_v35, %v797_v31 }
 0x50d   : > { %v1264_v39 = vpop.f32.mrf.mxu1 }
 0x50e   : > { %997 = vst.msk [vmem:[%s1656_s17 + $0x28] sm:$0xff] %vm991_vm4, %v988_v14  ;;  %v987_v13 = vadd.f32 %v979_v33, %v957_v37  ;;  %v972_v41 = vadd.f32 %v1264_v39, %v812_v38 }
 0x50f   : > { %v966_v43 = vpop.f32.mrf.mxu1 }
 0x510   : > { %996 = vst.msk [vmem:[%s1656_s17 + $0x20] sm:$0xff] %vm991_vm4, %v987_v13  ;;  %v990_v44 = vadd.f32 %v982_v36, %v972_v41  ;;  %v967_v45 = vadd.f32 %v966_v43, %v807_v42 }
 0x512   : > { %999 = vst.msk [vmem:[%s1656_s17 + $0x38] sm:$0xff] %vm991_vm4, %v990_v44  ;;  %v989_v16 = vadd.f32 %v981_v40, %v967_v45 }
 0x514   : > { %998 = vst.msk [vmem:[%s1656_s17 + $0x30] sm:$0xff] %vm991_vm4, %v989_v16 }
 0x515 PF: > { %p1271_p5 = scmp.ge.s32.totalorder %s1373_s12, 2  ;;  %s1034_s19 = sand.u32 1, %s1361_s30  }
 0x516   : > { %s1035_s25 = scalar_lea.sflag [#allocation3], %s1034_s19 }
 0x517   : > { %p1268_p13 = pnand %p1271_p5, %p1471_p6 }
 0x519   : > { %p1269_p0 = pneg %p1268_p13 }
 0x51b   : > { %1356 = dma.done.wait (%p1269_p0), %s1035_s25, 128  }
 0x51c   : > { %1358 = vsyncadd (%p1269_p0), %s1035_s25, 4294967168  ;;  %p20_p1 = scmp.ge.s32.totalorder %s1454_s15, 4   ;;  %s1719_s30 = smov %s1365_s10 }
 0x51d   : > { %s1720_s10 = smov %s1369_s11  ;;  %s1721_s11 = smov %s1465_s18 }
 0x51e   : > { %s1722_s12 = smov %s1454_s15  ;;  %22 = sbr.rel (!%p20_p1) target bundleno = 6 (0x6), region = 108 }
 0x523   :  { %1048 = vsyncpa [#allocation3], 1 }
 0x524   :  { %1050 = vsyncpa [#allocation3 + $0x1], 1 }

</bundles_post_ra>
